<compile_context>
chip_gen: v6e
topology: v6e:2x2x1
jax: 0.10.0
libtpu: 0.0.40
codegen_flags: <defaults>
</compile_context>

<pallas_src>
from functools import partial

import jax
import jax.numpy as jnp
from jax.experimental import pallas as pl
from jax.experimental.pallas import tpu as pltpu

LN_EPS = 1e-6


# ------------------------------- Pallas kernel -------------------------------
def _patch_embed_kernel(p_ref, w_ref, b_ref, *rest, use_norm):
    """Fused patch-embed: (Mp,K)@(K,E) + bias [+ LayerNorm over E].

    p_ref : (Mp, K) bf16   flattened patches (rows = b*N + patch index)
    w_ref : (K, E)  bf16   Conv2d weight reshaped to a linear map
    b_ref : (1, E)  f32    Conv2d bias
    rest  : [g_ref, beta_ref,] o_ref   (LN params only when use_norm)
    """
    o_ref = rest[-1]
    y = jnp.dot(p_ref[...], w_ref[...], preferred_element_type=jnp.float32)
    y = y + b_ref[...]
    if use_norm:
        g_ref, beta_ref = rest[0], rest[1]
        mu = jnp.mean(y, axis=-1, keepdims=True)
        yc = y - mu
        var = jnp.mean(yc * yc, axis=-1, keepdims=True)
        y = yc * jax.lax.rsqrt(var + LN_EPS) * g_ref[...] + beta_ref[...]
    o_ref[...] = y


# --------------------------------- wrapper ------------------------------------
def audio_patch_embed(x, conv_w, conv_b, *, patch_size, patch_stride=None,
                      flatten=False, ln_gamma=None, ln_beta=None):
    """Pallas AudioPatchEmbed.forward.

    x      : (B, C, F, T) float32 spectrogram
    conv_w : (E, C, P, P) Conv2d weight, conv_b: (E,) bias
    Returns (B, E, F//P, T//P) if not flatten, else (B, N, E)  ('b (f t) c').
    """
    ph, pw = (patch_size if isinstance(patch_size, (tuple, list))
              else (patch_size, patch_size))
    if patch_stride is None:
        patch_stride = (ph, pw)
    sh, sw = (patch_stride if isinstance(patch_stride, (tuple, list))
              else (patch_stride, patch_stride))
    # TODO(synk): overlapping patches (patch_stride != patch_size) would need an
    # unfold-style gather; only the stride==kernel case (as used by the MAE) is
    # implemented here.
    assert (sh, sw) == (ph, pw), "only patch_stride == patch_size supported"

    Bq, C, F, T = x.shape
    assert F % ph == 0 and T % pw == 0
    Gf, Gt = F // ph, T // pw
    N = Gf * Gt
    E = conv_w.shape[0]
    K = C * ph * pw

    # --- patch extraction (index plumbing, plain JAX) -> (B*N, K) rows ordered
    #     (b, i, j) with K flattened in (c, kh, kw) order (matches Conv2d) ----
    p = x.reshape(Bq, C, Gf, ph, Gt, pw).transpose(0, 2, 4, 1, 3, 5)
    p = p.reshape(Bq * N, K)

    M = Bq * N
    Mp = -(-M // 8) * 8                 # pad rows once to a sublane multiple
    if Mp != M:
        p = jnp.pad(p, ((0, Mp - M), (0, 0)))

    # Conv2d weight (E, C, P, P) -> linear map (K, E); same (c, kh, kw) order.
    w_mat = conv_w.reshape(E, K).T

    use_norm = ln_gamma is not None
    # (LayerNorm over embed_dim corresponds to the flatten=True / timm usage.)

    in_arrays = [p.astype(jnp.bfloat16),
                 w_mat.astype(jnp.bfloat16),
                 conv_b.reshape(1, E).astype(jnp.float32)]
    in_specs = [pl.BlockSpec((Mp, K), lambda i: (0, 0)),
                pl.BlockSpec((K, E), lambda i: (0, 0)),
                pl.BlockSpec((1, E), lambda i: (0, 0))]
    if use_norm:
        in_arrays += [ln_gamma.reshape(1, E).astype(jnp.float32),
                      ln_beta.reshape(1, E).astype(jnp.float32)]
        in_specs += [pl.BlockSpec((1, E), lambda i: (0, 0)),
                     pl.BlockSpec((1, E), lambda i: (0, 0))]

    out = pl.pallas_call(
        partial(_patch_embed_kernel, use_norm=use_norm),
        grid=(1,),                                   # one step: no grid overhead
        in_specs=in_specs,
        out_specs=pl.BlockSpec((Mp, E), lambda i: (0, 0)),   # lane-dense E=128
        out_shape=jax.ShapeDtypeStruct((Mp, E), jnp.float32),
        compiler_params=pltpu.CompilerParams(
            dimension_semantics=("arbitrary",)),
    )(*in_arrays)

    out = out[:M]
    if flatten:
        return out.reshape(Bq, N, E)                          # 'b (f t) c'
    return out.reshape(Bq, Gf, Gt, E).transpose(0, 3, 1, 2)   # (B, E, Gf, Gt)


# ----------------------------------- main -------------------------------------
if __name__ == "__main__":
    # Small shapes implied by the module: spectrogram (B, 1, F, T),
    # patch 4x4 (stride == kernel), embed_dim = 128 (lane-dense).
    B, C, F, T = 2, 1, 16, 16
    P = 4
    E = 128

    root = jax.random.PRNGKey(0)
    kx, kw, kb = jax.random.split(root, 3)
    x = jax.random.normal(kx, (B, C, F, T), dtype=jnp.float32)
    conv_w = 0.02 * jax.random.normal(kw, (E, C, P, P), dtype=jnp.float32)
    conv_b = 0.02 * jax.random.normal(kb, (E,), dtype=jnp.float32)

    # ---- default config: flatten=False, norm=Identity (module defaults) ----
    y = audio_patch_embed(x, conv_w, conv_b, patch_size=P, flatten=False)
    y = jax.block_until_ready(y)
    assert y.shape == (B, E, F // P, T // P)

    ref = jax.lax.conv_general_dilated(
        x, conv_w, window_strides=(P, P), padding="VALID",
        dimension_numbers=("NCHW", "OIHW", "NCHW"),
        precision=jax.lax.Precision.HIGHEST) + conv_b.reshape(1, E, 1, 1)
    assert jnp.allclose(y, ref, atol=2e-2, rtol=2e-2)

    # ---- flatten=True + fused LayerNorm path (timm-style usage) ----
    ln_g = jnp.ones((E,), jnp.float32)
    ln_b = jnp.zeros((E,), jnp.float32)
    y2 = audio_patch_embed(x, conv_w, conv_b, patch_size=P, flatten=True,
                           ln_gamma=ln_g, ln_beta=ln_b)
    y2 = jax.block_until_ready(y2)
    assert y2.shape == (B, (F // P) * (T // P), E)

    ref2 = ref.reshape(B, E, -1).transpose(0, 2, 1)
    mu = ref2.mean(-1, keepdims=True)
    var = ((ref2 - mu) ** 2).mean(-1, keepdims=True)
    ref2 = (ref2 - mu) * jax.lax.rsqrt(var + LN_EPS)
    assert jnp.allclose(y2, ref2, atol=2e-2, rtol=2e-2)

    assert bool(jnp.all(jnp.isfinite(y))) and bool(jnp.all(jnp.isfinite(y2)))
    print("KERNEL_OK")
</pallas_src>

<mosaic_0001>
module attributes {stable_mosaic.version = 11 : i64} {
  func.func @_patch_embed_kernel(%arg0: i32, %arg1: memref<32x16xbf16, #tpu.memory_space<vmem>>, %arg2: memref<16x128xbf16, #tpu.memory_space<vmem>>, %arg3: memref<1x128xf32, #tpu.memory_space<vmem>>, %arg4: memref<32x128xf32, #tpu.memory_space<vmem>>) attributes {dimension_semantics = [#tpu.dimension_semantics<arbitrary>], iteration_bounds = array<i64: 1>, scalar_prefetch = 0 : i64, scratch_operands = 0 : i64, tpu.core_type = #tpu.core_type<tc>, window_params = [{pipeline_mode = #tpu.pipeline_mode<synchronous>, transform_indices = @transform_0, window_bounds = array<i64: 32, 16>}, {pipeline_mode = #tpu.pipeline_mode<synchronous>, transform_indices = @transform_1, window_bounds = array<i64: 16, 128>}, {pipeline_mode = #tpu.pipeline_mode<synchronous>, transform_indices = @transform_2, window_bounds = array<i64: 1, 128>}, {pipeline_mode = #tpu.pipeline_mode<synchronous>, transform_indices = @transform_3, window_bounds = array<i64: 32, 128>}]} {
    %c0 = arith.constant 0 : index
    %c0_0 = arith.constant 0 : index
    %0 = vector.load %arg1[%c0, %c0_0] : memref<32x16xbf16, #tpu.memory_space<vmem>>, vector<32x16xbf16>
    %c0_1 = arith.constant 0 : index
    %c0_2 = arith.constant 0 : index
    %1 = vector.load %arg2[%c0_1, %c0_2] : memref<16x128xbf16, #tpu.memory_space<vmem>>, vector<16x128xbf16>
    %cst = arith.constant dense<0.000000e+00> : vector<32x128xf32>
    %2 = tpu.matmul %0, %1, %cst {dimension_numbers = #tpu.dot_dimension_numbers<[1], [0], [0], [1], [0, 0, 1, 1], [], []>} : vector<32x16xbf16>, vector<16x128xbf16>, vector<32x128xf32> -> vector<32x128xf32>
    %c0_3 = arith.constant 0 : index
    %c0_4 = arith.constant 0 : index
    %3 = vector.load %arg3[%c0_3, %c0_4] : memref<1x128xf32, #tpu.memory_space<vmem>>, vector<1x128xf32>
    %4 = vector.broadcast %3 : vector<1x128xf32> to vector<32x128xf32>
    %5 = arith.addf %2, %4 : vector<32x128xf32>
    %c0_5 = arith.constant 0 : index
    %c0_6 = arith.constant 0 : index
    %6 = vector.load %arg4[%c0_5, %c0_6] : memref<32x128xf32, #tpu.memory_space<vmem>>, vector<32x128xf32>
    tpu.vector_store %arg4[%c0_5, %c0_6], %5 {strides = array<i32>} : memref<32x128xf32, #tpu.memory_space<vmem>>, vector<32x128xf32>,
    return
  }
  func.func @transform_0(%arg0: i32) -> (i32, i32) {
    %c0_i32 = arith.constant 0 : i32
    %c0_i32_0 = arith.constant 0 : i32
    %c0_i32_1 = arith.constant 0 : i32
    return %c0_i32, %c0_i32_0 : i32, i32
  }
  func.func @transform_1(%arg0: i32) -> (i32, i32) {
    %c0_i32 = arith.constant 0 : i32
    %c0_i32_0 = arith.constant 0 : i32
    %c0_i32_1 = arith.constant 0 : i32
    return %c0_i32, %c0_i32_0 : i32, i32
  }
  func.func @transform_2(%arg0: i32) -> (i32, i32) {
    %c0_i32 = arith.constant 0 : i32
    %c0_i32_0 = arith.constant 0 : i32
    %c0_i32_1 = arith.constant 0 : i32
    return %c0_i32, %c0_i32_0 : i32, i32
  }
  func.func @transform_3(%arg0: i32) -> (i32, i32) {
    %c0_i32 = arith.constant 0 : i32
    %c0_i32_0 = arith.constant 0 : i32
    %c0_i32_1 = arith.constant 0 : i32
    return %c0_i32, %c0_i32_0 : i32, i32
  }
}

</mosaic_0001>

<bundles_post_ra>
// kernel: tpu_custom_call.1
= control target key start
LH: loop header
LB: loop body
LE: loop exit
PB: predicated region body
PF: predicated region fallthrough
CT: control target
= control target key end

     0   :  { %vm45_vm0 = vcmask 130048   ;;  %s202_s0 = inlined_call_operand.vmem [shape: bf16[32,16], index: 0, kind: input, shape index: {}]   ;;  %s203_s1 = inlined_call_operand.vmem [shape: bf16[16,128], index: 1, kind: input, shape index: {}]   ;;  %s204_s2 = inlined_call_operand.vmem [shape: f32[1,128], index: 2, kind: input, shape index: {}]   ;;  %s205_s3 = inlined_call_operand.hbm [shape: f32[32,128], index: 3, kind: output, shape index: {}]  }
   0x1   :  { %v139_v0 = vld [vmem:[%s203_s1] sm:$0xff]   ;;  %v141_v2 = vld [vmem:[%s202_s0 + $0x8] sm:$0xff]  }
   0x2   :  { %v140_v1 = vld [vmem:[%s202_s0] sm:$0xff]   ;;  %130 = vmatprep.subr.bf16.mxu0 %v139_v0 }
   0x3   :  { %131 = vmatpush3.bf16.msra.mxu0 %v139_v0  ;;  %132 = vmatprep.mubr.msk.bf16.mxu0 %vm45_vm0, %v140_v1 }
   0x4   :  { %8 = vsyncpa [#allocation3], 0  ;;  %v121_v3 = vld [vmem:[%s204_s2] ss:$0 sm:$0xff]  ;;  %s164_s1 = smov [#allocation2]  }
   0x5   :  { %s110_s20 = sshll.u32 %s164_s1, 4  ;;  %s111_s20 = int_to_ptr.vmem [resolvable:$true] %s110_s20 }
   0x6   :  { %133 = vmatmul.mubr.msk.bf16.vlgmr.msra.gmra.mxu0 %vm45_vm0, %v141_v2  ;;  %s142_s0 = scalar_lea.vmem %s111_s20, 512  ;;  %p147_p1 = scmp.lt.s32.totalorder %s111_s20, %s111_s20 }
   0x7   :  { %p143_p0 = scmp.ne.s32.totalorder %s111_s20, %s142_s0  ;;  %p148_p2 = scmp.lt.s32.totalorder %s142_s0, %s142_s0 }
   0x9   :  { %p149_p3 = por %p148_p2, %p147_p1 }
   0xb   :  { %p150_p4 = pnand %p149_p3, %p143_p0 }
  0xc6   :  { %v134_v4 = vpop.f32.mrf.mxu0 }
  0xc7   :  { %v95_v5 = vadd.f32 %v134_v4, %v121_v3 }
  0xc8   :  { %v86_v6 = vpop.f32.mrf.mxu0 }
  0xc9   :  { %103 = vst [vmem:[#allocation2 + $0x10] sm:$0xff] %v95_v5  ;;  %v87_v7 = vadd.f32 %v121_v3, %v86_v6 }
  0xca   :  { %v135_v8 = vpop.f32.mrf.mxu0 }
  0xcb   :  { %101 = vst [vmem:[#allocation2] sm:$0xff] %v87_v7  ;;  %v98_v9 = vadd.f32 %v135_v8, %v121_v3 }
  0xcc   :  { %v89_v10 = vpop.f32.mrf.mxu0 }
  0xcd   :  { %104 = vst [vmem:[#allocation2 + $0x18] sm:$0xff] %v98_v9  ;;  %v90_v11 = vadd.f32 %v121_v3, %v89_v10 }
  0xcf   :  { %102 = vst [vmem:[#allocation2 + $0x8] sm:$0xff] %v90_v11 }
  0xd0   :  { %153 = shalt.err (!%p150_p4)
}
  0xd1   :  { %s165_s2 = smov 128   ;;  %s166_s21 = smov 8  }
  0xd2   :  { %116 = dma.vmem_to_hbm [thread:$0]  %s111_s20, 512, %s205_s3, [#allocation3], %s165_s2, %s165_s2, %s166_s21  }
  0xd3   :  { %162 = dma.done.wait [#allocation3], 512  }
  0xd4   :  { %163 = vsyncadd [#allocation3], 4294966784 }
  0xd5   :  { %120 = vsyncpa [#allocation3], 1 }

</bundles_post_ra>
